<compile_context>
chip_gen: v7x
topology: tpu7x:2x2x1
jax: 0.10.0
libtpu: 0.0.40
codegen_flags: <defaults>
</compile_context>

<pallas_src>
import numpy as np
import jax
import jax.numpy as jnp
from jax.experimental import pallas as pl
from jax.experimental.pallas import tpu as pltpu

EPS = 1e-5  # nn.GroupNorm default eps


def _round_up(a, m):
    return (a + m - 1) // m * m


# ---------------------------------------------------------------------------
# Kernel 1: per-(batch, band) GroupNorm statistics, accumulated over T tiles.
# ---------------------------------------------------------------------------
def _band_stats_kernel(x_ref, m_ref, mt_ref, invc_ref, ss_ref):
    """Accumulate per-channel [sum, sumsq]; epilogue -> per-channel [scale, shift].

    x_ref    : VMEM (1, TILE_T, C)   C = 2*F, f32 input tile.
    m_ref    : VMEM (C, K)           band indicator: M[c,k] = 1 iff channel c in band k.
    mt_ref   : VMEM (K, C)           its transpose.
    invc_ref : VMEM (1, K)           1 / (2*s_k * T_true).
    ss_ref   : VMEM (1, 2, C)        resident accumulator; final [scale; shift].
    """
    t = pl.program_id(1)

    @pl.when(t == 0)
    def _init():
        ss_ref[...] = jnp.zeros_like(ss_ref)

    x = x_ref[0]                                               # (TILE_T, C) f32
    s = jnp.sum(x, axis=0, keepdims=True)                      # (1, C)
    sq = jnp.sum(x * x, axis=0, keepdims=True)                 # (1, C)
    ss_ref[0] = ss_ref[0] + jnp.concatenate([s, sq], axis=0)   # (2, C)

    @pl.when(t == pl.num_programs(1) - 1)
    def _finalize():
        sums = ss_ref[0]                                       # (2, C): [sum; sumsq]
        band = jnp.dot(sums, m_ref[...],
                       preferred_element_type=jnp.float32) * invc_ref[...]  # (2, K)
        mean_k = band[0:1, :]
        # Single-pass variance E[x^2] - E[x]^2 (clamped), eps as in GroupNorm.
        var_k = jnp.maximum(band[1:2, :] - mean_k * mean_k, 0.0)
        scale_k = jax.lax.rsqrt(var_k + EPS)                   # (1, K)
        sk = jnp.concatenate([scale_k, -mean_k * scale_k], axis=0)          # (2, K)
        # Broadcast band values back to channels: row0 = scale, row1 = shift,
        # so the normalize kernel computes xn = x*scale + shift.
        ss_ref[0] = jnp.dot(sk, mt_ref[...], preferred_element_type=jnp.float32)


# ---------------------------------------------------------------------------
# Kernel 2: normalize + all K 1x1 convs as one block-diagonal bf16 matmul.
# ---------------------------------------------------------------------------
def _norm_matmul_kernel(x_ref, ss_ref, w_ref, bias_ref, o_ref):
    """xn = x*scale + shift in f32, then one bf16 MXU matmul (f32 accumulate).

    x_ref    : VMEM (1, TILE_T, C)    f32
    ss_ref   : VMEM (1, 2, C)         f32 [scale; shift]
    w_ref    : VMEM (C, K*N)          bf16 block-diag conv weight (GN affine folded)
    bias_ref : VMEM (1, K*N)          f32 folded bias
    o_ref    : VMEM (1, TILE_T, K*N)  lane-dense output
    """
    x = x_ref[0]                                    # (TILE_T, C) f32
    ss = ss_ref[0]                                  # (2, C)
    xn = x * ss[0:1, :] + ss[1:2, :]                # f32 elementwise (VPU)
    out = jnp.dot(xn.astype(w_ref.dtype), w_ref[...],
                  preferred_element_type=jnp.float32)           # (TILE_T, K*N)
    o_ref[0] = (out + bias_ref[...]).astype(o_ref.dtype)


# ---------------------------------------------------------------------------
# One-time parameter packing (runs at parameter-load time, cached).
# ---------------------------------------------------------------------------
def pack_bandsplit_params(subbands, params, *, matmul_dtype=jnp.bfloat16):
    """Folds the GroupNorm affine into the 1x1-conv weights/bias:
        ((x-mean)*inv_std*gamma + beta) @ W + b
          = ((x-mean)*inv_std) @ (diag(gamma) @ W) + (beta @ W + b)
    and builds the block-diagonal matmul weight (stored bf16 for the MXU).
    """
    dims = np.asarray([2 * int(s) for s in subbands], dtype=np.int64)     # (K,)
    C = int(dims.sum())
    K = len(subbands)
    N = int(np.asarray(params['w'][0]).shape[0])

    m_np = np.zeros((C, K), dtype=np.float32)
    w_bd = np.zeros((C, K * N), dtype=np.float32)
    c0 = 0
    for k, d in enumerate(dims):
        m_np[c0:c0 + d, k] = 1.0
        w_bd[c0:c0 + d, k * N:(k + 1) * N] = np.asarray(params['w'][k]).T
        c0 += d

    gamma = np.concatenate([np.asarray(g) for g in params['gamma']])      # (C,)
    beta = np.concatenate([np.asarray(b) for b in params['beta']])        # (C,)
    bias = np.concatenate([np.asarray(b) for b in params['b']])           # (K*N,)

    w_fold = gamma[:, None] * w_bd
    b_fold = bias + beta @ w_bd

    return {
        'dims': dims,
        'M': jnp.asarray(m_np, dtype=jnp.float32),
        'Mt': jnp.asarray(m_np.T, dtype=jnp.float32),
        'w_bd': jnp.asarray(w_fold, dtype=matmul_dtype),
        'bias': jnp.asarray(b_fold, dtype=jnp.float32).reshape(1, -1),
    }


# ---------------------------------------------------------------------------
# Wrapper
# ---------------------------------------------------------------------------
def band_split_pallas(x, subbands, packed, *, tile_t=512,
                      out_dtype=jnp.float32, as_bntk=False):
    """x: (B, T, F, 2) with F == sum(subbands).  Equivalent to forward(x, fs=None).

    Returns the lane-dense (B, T, K*N) block by default (downstream consumers
    should read it directly / fold the permutation into their BlockSpec);
    with as_bntk=True returns the module's (B, N, T, K) layout.
    """
    # TODO(synk): the `fs is not None` truncation branch (drop bands above
    # fs/2) is not implemented; only the fs=None path is reproduced.
    B, T, F, two = x.shape
    assert two == 2 and F == sum(subbands)
    K = len(subbands)
    C = 2 * F
    KN = packed['w_bd'].shape[1]
    N = KN // K

    x_flat = x.reshape(B, T, C)                      # free reshape, lane-dense

    # Time tiling: tile must be a multiple of 8 (sublanes); zero-pad the ragged
    # tail (zero rows add nothing to sum/sumsq; inv_cnt uses the true T).
    tile_t = max(8, min(_round_up(tile_t, 8), _round_up(T, 8)))
    t_pad = _round_up(T, tile_t)
    if t_pad != T:
        x_flat = jnp.pad(x_flat, ((0, 0), (0, t_pad - T), (0, 0)))
    n_t = t_pad // tile_t

    inv_cnt = jnp.asarray(1.0 / (packed['dims'] * T),
                          dtype=jnp.float32).reshape(1, K)

    # Explicit VMEM budget with headroom; safe on v5e/v6e (128 MiB) and under
    # v7x's 64 MiB physical VMEM.
    # TODO(synk): optionally mark grid-invariant inputs pl.Buffered(1) on v7x.
    vmem_limit = 48 * 1024 * 1024
    stats_params = pltpu.CompilerParams(
        dimension_semantics=("parallel", "arbitrary"),
        vmem_limit_bytes=vmem_limit)
    mm_params = pltpu.CompilerParams(
        dimension_semantics=("parallel", "parallel"),
        vmem_limit_bytes=vmem_limit)

    # ---- kernel 1: band stats -> per-channel [scale, shift] per batch item ----
    ss = pl.pallas_call(
        _band_stats_kernel,
        out_shape=jax.ShapeDtypeStruct((B, 2, C), jnp.float32),
        grid_spec=pltpu.PrefetchScalarGridSpec(
            num_scalar_prefetch=0,
            grid=(B, n_t),
            in_specs=[
                pl.BlockSpec((1, tile_t, C), lambda b, t: (b, t, 0)),
                pl.BlockSpec((C, K), lambda b, t: (0, 0)),
                pl.BlockSpec((K, C), lambda b, t: (0, 0)),
                pl.BlockSpec((1, K), lambda b, t: (0, 0)),
            ],
            out_specs=pl.BlockSpec((1, 2, C), lambda b, t: (b, 0, 0)),
        ),
        compiler_params=stats_params,
    )(x_flat, packed['M'], packed['Mt'], inv_cnt)

    # ---- kernel 2: normalize + block-diagonal 1x1 conv (bf16 MXU matmul) ----
    out_btd = pl.pallas_call(
        _norm_matmul_kernel,
        out_shape=jax.ShapeDtypeStruct((B, t_pad, KN), out_dtype),
        grid_spec=pltpu.PrefetchScalarGridSpec(
            num_scalar_prefetch=0,
            grid=(B, n_t),
            in_specs=[
                pl.BlockSpec((1, tile_t, C), lambda b, t: (b, t, 0)),
                pl.BlockSpec((1, 2, C), lambda b, t: (b, 0, 0)),
                pl.BlockSpec((C, KN), lambda b, t: (0, 0)),
                pl.BlockSpec((1, KN), lambda b, t: (0, 0)),
            ],
            out_specs=pl.BlockSpec((1, tile_t, KN), lambda b, t: (b, t, 0)),
        ),
        compiler_params=mm_params,
    )(x_flat, ss, packed['w_bd'], packed['bias'])

    if t_pad != T:
        out_btd = out_btd[:, :T, :]
    if not as_bntk:
        return out_btd                               # lane-dense (B, T, K*N)
    # Compatibility layout (B, N, T, K): a standalone XLA transpose that
    # re-reads the whole output -- prefer consuming the lane-dense block.
    return jnp.transpose(out_btd.reshape(B, T, K, N), (0, 3, 1, 2))


# ---------------------------------------------------------------------------
# Pure-JAX reference mirroring the PyTorch forward (fs=None) and synthetic params.
# ---------------------------------------------------------------------------
def band_split_reference(x, subbands, params):
    B, T, F, _ = x.shape
    outs = []
    hz = 0
    for i, s in enumerate(subbands):
        d = 2 * s
        xb = x[:, :, hz:hz + s, :].reshape(B, T, d)
        xb = jnp.transpose(xb, (0, 2, 1))                     # (B, 2s, T)
        mean = jnp.mean(xb, axis=(1, 2), keepdims=True)
        var = jnp.var(xb, axis=(1, 2), keepdims=True)
        xn = (xb - mean) / jnp.sqrt(var + EPS)
        xn = xn * params['gamma'][i][None, :, None] + \
            params['beta'][i][None, :, None]
        out = jnp.einsum('bdt,nd->bnt', xn, params['w'][i]) + \
            params['b'][i][None, :, None]
        outs.append(out)
        hz += s
    return jnp.stack(outs, axis=-1)                           # (B, N, T, K)


def make_params(key, subbands, channels):
    params = {'w': [], 'b': [], 'gamma': [], 'beta': []}
    for s in subbands:
        d = 2 * s
        key, k1, k2, k3, k4 = jax.random.split(key, 5)
        params['w'].append(
            jax.random.normal(k1, (channels, d), jnp.float32) * (1.0 / d) ** 0.5)
        params['b'].append(
            jax.random.normal(k2, (channels,), jnp.float32) * 0.1)
        params['gamma'].append(
            1.0 + 0.1 * jax.random.normal(k3, (d,), jnp.float32))
        params['beta'].append(
            0.1 * jax.random.normal(k4, (d,), jnp.float32))
    return params


if __name__ == "__main__":
    # Faithful config: input_dim=161, target_fs=16000  ->  F = 161, K = 30 bands
    subbands = tuple([2] * 20 + [5] * 6 + [20] * 3 + [31])
    F = sum(subbands)                 # 161 == input_dim
    B, T, N = 2, 12, 32               # small; T=12 exercises tiling + padding

    key = jax.random.PRNGKey(0)
    key, kx, kp = jax.random.split(key, 3)
    x = jax.random.normal(kx, (B, T, F, 2), jnp.float32)      # (B, T, F, 2)
    params = make_params(kp, subbands, N)
    packed = pack_bandsplit_params(subbands, params)

    z = band_split_pallas(x, subbands, packed, tile_t=8, as_bntk=True)
    z = jax.block_until_ready(z)
    assert z.shape == (B, N, T, len(subbands)), z.shape

    z_ref = jax.block_until_ready(band_split_reference(x, subbands, params))
    # bf16 MXU matmul path -> tolerance loosened from the all-f32 1e-4 check.
    if not bool(jnp.allclose(z, z_ref, rtol=3e-2, atol=3e-2)):
        raise AssertionError(
            f"mismatch: max abs err {float(jnp.max(jnp.abs(z - z_ref)))}")

    print("KERNEL_OK")
</pallas_src>

<mosaic_0001>
module attributes {stable_mosaic.version = 11 : i64} {
  func.func @_band_stats_kernel(%arg0: i32, %arg1: i32, %arg2: memref<1x8x322xf32, #tpu.memory_space<vmem>>, %arg3: memref<322x30xf32, #tpu.memory_space<vmem>>, %arg4: memref<30x322xf32, #tpu.memory_space<vmem>>, %arg5: memref<1x30xf32, #tpu.memory_space<vmem>>, %arg6: memref<1x2x322xf32, #tpu.memory_space<vmem>>) attributes {dimension_semantics = [#tpu.dimension_semantics<parallel>, #tpu.dimension_semantics<arbitrary>], iteration_bounds = array<i64: 2, 2>, scalar_prefetch = 0 : i64, scratch_operands = 0 : i64, tpu.core_type = #tpu.core_type<tc>, window_params = [{transform_indices = @transform_0, window_bounds = array<i64: 1, 8, 322>}, {pipeline_mode = #tpu.pipeline_mode<synchronous>, transform_indices = @transform_1, window_bounds = array<i64: 322, 30>}, {pipeline_mode = #tpu.pipeline_mode<synchronous>, transform_indices = @transform_2, window_bounds = array<i64: 30, 322>}, {pipeline_mode = #tpu.pipeline_mode<synchronous>, transform_indices = @transform_3, window_bounds = array<i64: 1, 30>}, {transform_indices = @transform_4, window_bounds = array<i64: 1, 2, 322>}]} {
    %c0_i32 = arith.constant 0 : i32
    %0 = arith.cmpi eq, %arg1, %c0_i32 : i32
    %1 = arith.extui %0 : i1 to i32
    %c0_i32_0 = arith.constant 0 : i32
    %2 = arith.cmpi ne, %1, %c0_i32_0 : i32
    scf.if %2 {
      %cst_11 = arith.constant 0.000000e+00 : f32
      %20 = vector.broadcast %cst_11 : f32 to vector<1x2x322xf32>
      %c0_12 = arith.constant 0 : index
      %c0_13 = arith.constant 0 : index
      %c0_14 = arith.constant 0 : index
      %21 = vector.load %arg6[%c0_12, %c0_13, %c0_14] : memref<1x2x322xf32, #tpu.memory_space<vmem>>, vector<1x2x322xf32>
      tpu.vector_store %arg6[%c0_12, %c0_13, %c0_14], %20 {strides = array<i32>} : memref<1x2x322xf32, #tpu.memory_space<vmem>>, vector<1x2x322xf32>,
    } else {
    }
    %c0 = arith.constant 0 : index
    %c0_1 = arith.constant 0 : index
    %c0_2 = arith.constant 0 : index
    %3 = vector.load %arg2[%c0, %c0_1, %c0_2] : memref<1x8x322xf32, #tpu.memory_space<vmem>>, vector<1x8x322xf32>
    %4 = vector.shape_cast %3 : vector<1x8x322xf32> to vector<8x322xf32>
    %cst = arith.constant dense<0.000000e+00> : vector<322xf32>
    %5 = vector.multi_reduction <add>, %4, %cst [0] : vector<8x322xf32> to vector<322xf32>
    %6 = vector.shape_cast %5 : vector<322xf32> to vector<1x322xf32>
    %7 = arith.mulf %4, %4 : vector<8x322xf32>
    %cst_3 = arith.constant dense<0.000000e+00> : vector<322xf32>
    %8 = vector.multi_reduction <add>, %7, %cst_3 [0] : vector<8x322xf32> to vector<322xf32>
    %9 = vector.shape_cast %8 : vector<322xf32> to vector<1x322xf32>
    %c0_4 = arith.constant 0 : index
    %c0_5 = arith.constant 0 : index
    %c0_6 = arith.constant 0 : index
    %10 = vector.load %arg6[%c0_4, %c0_5, %c0_6] : memref<1x2x322xf32, #tpu.memory_space<vmem>>, vector<1x2x322xf32>
    %11 = vector.shape_cast %10 : vector<1x2x322xf32> to vector<2x322xf32>
    %12 = tpu.concatenate %6, %9 in 0 : vector<1x322xf32>, vector<1x322xf32> -> vector<2x322xf32>
    %13 = arith.addf %11, %12 : vector<2x322xf32>
    %c0_7 = arith.constant 0 : index
    %c0_8 = arith.constant 0 : index
    %c0_9 = arith.constant 0 : index
    %14 = vector.load %arg6[%c0_7, %c0_8, %c0_9] : memref<1x2x322xf32, #tpu.memory_space<vmem>>, vector<1x2x322xf32>
    %15 = vector.shape_cast %14 : vector<1x2x322xf32> to vector<2x322xf32>
    %16 = vector.shape_cast %13 : vector<2x322xf32> to vector<1x2x322xf32>
    tpu.vector_store %arg6[%c0_7, %c0_8, %c0_9], %16 {strides = array<i32>} : memref<1x2x322xf32, #tpu.memory_space<vmem>>, vector<1x2x322xf32>,
    %c1_i32 = arith.constant 1 : i32
    %17 = arith.cmpi eq, %arg1, %c1_i32 : i32
    %18 = arith.extui %17 : i1 to i32
    %c0_i32_10 = arith.constant 0 : i32
    %19 = arith.cmpi ne, %18, %c0_i32_10 : i32
    scf.if %19 {
      %c0_11 = arith.constant 0 : index
      %c0_12 = arith.constant 0 : index
      %c0_13 = arith.constant 0 : index
      %20 = vector.load %arg6[%c0_11, %c0_12, %c0_13] : memref<1x2x322xf32, #tpu.memory_space<vmem>>, vector<1x2x322xf32>
      %21 = vector.shape_cast %20 : vector<1x2x322xf32> to vector<2x322xf32>
      %c0_14 = arith.constant 0 : index
      %c0_15 = arith.constant 0 : index
      %22 = vector.load %arg3[%c0_14, %c0_15] : memref<322x30xf32, #tpu.memory_space<vmem>>, vector<322x30xf32>
      %cst_16 = arith.constant dense<0.000000e+00> : vector<2x30xf32>
      %23 = tpu.matmul %21, %22, %cst_16 {dimension_numbers = #tpu.dot_dimension_numbers<[1], [0], [0], [1], [0, 0, 1, 1], [], []>} : vector<2x322xf32>, vector<322x30xf32>, vector<2x30xf32> -> vector<2x30xf32>
      %c0_17 = arith.constant 0 : index
      %c0_18 = arith.constant 0 : index
      %24 = vector.load %arg5[%c0_17, %c0_18] : memref<1x30xf32, #tpu.memory_space<vmem>>, vector<1x30xf32>
      %25 = vector.broadcast %24 : vector<1x30xf32> to vector<2x30xf32>
      %26 = arith.mulf %23, %25 : vector<2x30xf32>
      %27 = vector.extract_strided_slice %26 {offsets = [0, 0], sizes = [1, 30], strides = [1, 1]} : vector<2x30xf32> to vector<1x30xf32>
      %28 = vector.extract_strided_slice %26 {offsets = [1, 0], sizes = [1, 30], strides = [1, 1]} : vector<2x30xf32> to vector<1x30xf32>
      %29 = arith.mulf %27, %27 : vector<1x30xf32>
      %30 = arith.subf %28, %29 : vector<1x30xf32>
      %cst_19 = arith.constant 0.000000e+00 : f32
      %31 = vector.broadcast %cst_19 : f32 to vector<1x30xf32>
      %32 = arith.maximumf %30, %31 : vector<1x30xf32>
      %cst_20 = arith.constant 9.99999974E-6 : f32
      %33 = vector.broadcast %cst_20 : f32 to vector<1x30xf32>
      %34 = arith.addf %32, %33 : vector<1x30xf32>
      %35 = math.rsqrt %34 : vector<1x30xf32>
      %cst_21 = arith.constant 0.000000e+00 : f32
      %36 = vector.broadcast %cst_21 : f32 to vector<1x30xf32>
      %37 = arith.subf %36, %27 : vector<1x30xf32>
      %38 = arith.mulf %37, %35 : vector<1x30xf32>
      %39 = tpu.concatenate %35, %38 in 0 : vector<1x30xf32>, vector<1x30xf32> -> vector<2x30xf32>
      %c0_22 = arith.constant 0 : index
      %c0_23 = arith.constant 0 : index
      %40 = vector.load %arg4[%c0_22, %c0_23] : memref<30x322xf32, #tpu.memory_space<vmem>>, vector<30x322xf32>
      %cst_24 = arith.constant dense<0.000000e+00> : vector<2x322xf32>
      %41 = tpu.matmul %39, %40, %cst_24 {dimension_numbers = #tpu.dot_dimension_numbers<[1], [0], [0], [1], [0, 0, 1, 1], [], []>} : vector<2x30xf32>, vector<30x322xf32>, vector<2x322xf32> -> vector<2x322xf32>
      %c0_25 = arith.constant 0 : index
      %c0_26 = arith.constant 0 : index
      %c0_27 = arith.constant 0 : index
      %42 = vector.load %arg6[%c0_25, %c0_26, %c0_27] : memref<1x2x322xf32, #tpu.memory_space<vmem>>, vector<1x2x322xf32>
      %43 = vector.shape_cast %42 : vector<1x2x322xf32> to vector<2x322xf32>
      %44 = vector.shape_cast %41 : vector<2x322xf32> to vector<1x2x322xf32>
      tpu.vector_store %arg6[%c0_25, %c0_26, %c0_27], %44 {strides = array<i32>} : memref<1x2x322xf32, #tpu.memory_space<vmem>>, vector<1x2x322xf32>,
    } else {
    }
    return
  }
  func.func @transform_0(%arg0: i32, %arg1: i32) -> (i32, i32, i32) {
    %c0_i32 = arith.constant 0 : i32
    %c0_i32_0 = arith.constant 0 : i32
    return %arg0, %arg1, %c0_i32 : i32, i32, i32
  }
  func.func @transform_1(%arg0: i32, %arg1: i32) -> (i32, i32) {
    %c0_i32 = arith.constant 0 : i32
    %c0_i32_0 = arith.constant 0 : i32
    %c0_i32_1 = arith.constant 0 : i32
    return %c0_i32, %c0_i32_0 : i32, i32
  }
  func.func @transform_2(%arg0: i32, %arg1: i32) -> (i32, i32) {
    %c0_i32 = arith.constant 0 : i32
    %c0_i32_0 = arith.constant 0 : i32
    %c0_i32_1 = arith.constant 0 : i32
    return %c0_i32, %c0_i32_0 : i32, i32
  }
  func.func @transform_3(%arg0: i32, %arg1: i32) -> (i32, i32) {
    %c0_i32 = arith.constant 0 : i32
    %c0_i32_0 = arith.constant 0 : i32
    %c0_i32_1 = arith.constant 0 : i32
    return %c0_i32, %c0_i32_0 : i32, i32
  }
  func.func @transform_4(%arg0: i32, %arg1: i32) -> (i32, i32, i32) {
    %c0_i32 = arith.constant 0 : i32
    %c0_i32_0 = arith.constant 0 : i32
    %c0_i32_1 = arith.constant 0 : i32
    return %arg0, %c0_i32, %c0_i32_0 : i32, i32, i32
  }
}

</mosaic_0001>

<bundles_post_ra>
// kernel: tpu_custom_call.1
= control target key start
LH: loop header
LB: loop body
LE: loop exit
PB: predicated region body
PF: predicated region fallthrough
CT: control target
= control target key end

     0   :  { %9 = vsyncpa [#allocation3], 0  ;;  %s1551_s0 = inlined_call_operand.vmem [shape: f32[2,16,322], index: 0, kind: input, shape index: {}]   ;;  %s1552_s1 = inlined_call_operand.vmem [shape: f32[322,30], index: 1, kind: input, shape index: {}]   ;;  %s1553_s2 = inlined_call_operand.vmem [shape: f32[30,322], index: 2, kind: input, shape index: {}]   ;;  %s1554_s3 = inlined_call_operand.vmem [shape: f32[1,30], index: 3, kind: input, shape index: {}]   ;;  %s1555_s4 = inlined_call_operand.hbm [shape: f32[2,2,322], index: 4, kind: output, shape index: {}]  }
   0x1   :  { %11 = vsyncpa [#allocation3 + $0x1], 0  ;;  %s1200_s15 = smov 0   ;;  %s1202_s16 = smov 0  }
   0x2   :  { %s1204_s17 = smov 0   ;;  %s1206_s18 = smov 0  }
   0x3   :  { %s1208_s19 = smov 0   ;;  %s1210_s20 = smov 0  }
   0x4   :  { %s1212_s21 = smov 0   ;;  %s1214_s22 = smov 0  }
   0x5 LB: > { %s826_s23 = sadd.s32 4294967295, %s1166_s22   ;;  %s827_s24 = sadd.s32 4294967294, %s1166_s22   ;;  %s1166_s22 = sphi %s1214_s22, %s17_s22   ;;  %s1162_s21 = sphi %s1212_s21, %s1568_s21   ;;  %s1158_s20 = sphi %s1210_s20, %s1567_s20   ;;  %s1154_s19 = sphi %s1208_s19, %s1566_s19   ;;  %s1150_s18 = sphi %s1206_s18, %s1565_s18   ;;  %s1146_s17 = sphi %s1204_s17, %s1564_s17   ;;  %s1142_s16 = sphi %s1202_s16, %s1563_s16   ;;  %s1138_s15 = sphi %s1200_s15, %s1562_s15  }
   0x6   : > { %s26_s25 = sadd.s32 1, %s1158_s20  ;;  %s29_s26 = sadd.s32 1, %s1162_s21 }
   0x7   : > { %p27_p0 = scmp.ge.s32.totalorder %s26_s25, 2  ;;  %p137_p1 = scmp.ne.s32.totalorder %s1146_s17, %s1142_s16 }
   0x8   : > { %p138_p2 = scmp.eq.s32.totalorder %s826_s23, 3  ;;  %p143_p4 = scmp.ne.s32.totalorder %s1142_s16, %s1138_s15 }
   0x9   : > { %s1570_s25 = smov (%p27_p0, %s26_s25), 0  ;;  %s1572_s26 = smov (!%p27_p0, %s29_s26), %s1162_s21 }
   0xa   : > { %p1249_p3 = por %p138_p2, %p137_p1  ;;  %p31_p5 = scmp.ge.s32.totalorder %s1572_s26, 2 }
   0xb   : > { %p144_p6 = scmp.eq.s32.totalorder %s827_s24, 3  ;;  %p830_p7 = scmp.ge.s32.totalorder %s1166_s22, 1 }
   0xc   : > { %p183_p8 = scmp.lt.s32.totalorder %s1166_s22, 5  ;;  %s1574_s26 = smov (%p31_p5, %s1572_s26), 0 }
   0xd   : > { %p1259_p9 = por %p144_p6, %p143_p4  ;;  %s124_s29 = ssub.s32 %s1162_s21, %s1574_s26 }
   0xe   : > { %p184_p10 = pnand %p830_p7, %p183_p8  ;;  %s127_s30 = sadd.s32 1, %s1146_s17 }
   0xf   : > { %p125_p11 = scmp.eq.s32.totalorder %s124_s29, 0  ;;  %s210_s6 = sand.u32 (!%p184_p10), 1, %s1142_s16  }
  0x10   : > { %187 = sbr.rel (%p184_p10) target bundleno = 577 (0x241), region = 36  ;;  %p213_p12 = scmp.lt.s32.totalorder (!%p184_p10), %s1154_s19, 1 }
  0x11   : > { %s1267_s5 = scalar_select %p125_p11, %s1146_s17, %s127_s30  }
  0x12   : > { %s988_s7 = smul.u32 (!%p184_p10), 6, %s210_s6  ;;  %p215_p13 = scmp.lt.s32.totalorder (!%p184_p10), %s1150_s18, 1 }
  0x13   : > { %p832_p0 = scmp.ne.s32.totalorder (!%p184_p10), %s1150_s18, 0 }
  0x14   : > { %s1279_s29 = scalar_lea.vmem (!%p184_p10), [#allocation2], %s988_s7 }
  0x17   : > { %s214_s8 = scalar_select %p213_p12, %s1154_s19, 1 }
  0x18   : > { %s216_s9 = scalar_select %p215_p13, %s1150_s18, 1 }
  0x19   : > { %s990_s10 = smul.u32 6, %s214_s8  ;;  %vm226_vm0 = vcmask (!%p832_p0), 1041408   ;;  %vm227_vm1 = vcmask (!%p832_p0), 1043458   ;;  %vm229_vm2 = vcmask (!%p832_p0), 537604   ;;  %v1168_v0 = vmov (!%p832_p0), 0.0  }
  0x1a   : > { %s989_s11 = smul.u32 3, %s216_s9  ;;  %vm228_vm3 = vmor (!%p832_p0), %vm227_vm1, %vm226_vm0 }
  0x1b   : > { %225 = sbr.rel (%p832_p0) target bundleno = 34 (0x22), region = 40  ;;  %vm230_vm4 = vmor (!%p832_p0), %vm229_vm2, %vm228_vm3 }
  0x1c   : > { %s219_s12 = sadd.s32 %s990_s10, %s989_s11  ;;  %231 = vst.msk [vmem:[%s1279_s29] sm:$0x3f] (!%p832_p0), %vm230_vm4, %v1168_v0 }
  0x1d   : > { %s831_s13 = sshll.u32 %s219_s12, 3 }
  0x1e   : > { %s221_s24 = scalar_lea.vmem %s1551_s0, %s831_s13 }
  0x22 PF: > { %v232_v1 = vld [vmem:[%s221_s24] sm:$0xff]  ;;  %v233_v2 = vld [vmem:[%s221_s24 + $0x8] sm:$0xff]  ;;  %v234_v3 = vld [vmem:[%s221_s24 + $0x10] sm:$0xff]  ;;  %vm247_vm5 = vcmask 539648   ;;  %v1169_v23 = vmov 1983009808   ;;  %v289_v25 = vlaneseq }
  0x23   : > { %v235_v4 = vrot.slane %v232_v1, 4  ;;  %v241_v5 = vrot.slane %v233_v2, 4  ;;  %v248_v6 = vsel %vm247_vm5, %v234_v3, 0.0  ;;  %v255_v7 = vmul.f32 %v232_v1, %v232_v1  ;;  %v277_v57 = vld [vmem:[%s1279_s29] sm:$0x3f]  ;;  %p833_p1 = scmp.ne.s32.totalorder %s1150_s18, 1 }
  0x24   : > { %v249_v8 = vrot.slane %v248_v6, 4  ;;  %v256_v9 = vmul.f32 %v233_v2, %v233_v2  ;;  %v257_v10 = vmul.f32 %v234_v3, %v234_v3  ;;  %v287_v24 = vunpack.c.l.s4 %v1169_v23  ;;  %v330_v61 = vld [vmem:[%s1552_s1 + $0x80] sm:$0xff] (!%p833_p1)  ;;  %v331_v62 = vld [vmem:[%s1552_s1 + $0x88] sm:$0xff] (!%p833_p1)  ;;  %v333_v3 = vld [vmem:[%s1552_s1 + $0x98] sm:$0xff] (!%p833_p1) }
  0x25   : > { %v236_v11 = vadd.f32 %v235_v4, %v232_v1  ;;  %v242_v12 = vadd.f32 %v241_v5, %v233_v2  ;;  %v258_v13 = vrot.slane %v255_v7, 4  ;;  %v290_v39 = vshrl.u32 %v289_v25, 7  ;;  %v314_v63 = vld [vmem:[%s1552_s1] sm:$0xff] (!%p833_p1)  ;;  %v315_v1 = vld [vmem:[%s1552_s1 + $0x8] sm:$0xff] (!%p833_p1)  ;;  %v332_v2 = vld [vmem:[%s1552_s1 + $0x90] sm:$0xff] (!%p833_p1) }
  0x26   : > { %v250_v14 = vadd.f32 %v249_v8, %v248_v6  ;;  %v264_v15 = vrot.slane %v256_v9, 4  ;;  %v270_v16 = vsel %vm247_vm5, %v257_v10, 0.0  ;;  %v288_v38 = vunpack.c.0.s8 %v287_v24  ;;  %v316_v8 = vld [vmem:[%s1552_s1 + $0x10] sm:$0xff] (!%p833_p1)  ;;  %v334_v10 = vld [vmem:[%s1552_s1 + $0xa0] sm:$0xff] (!%p833_p1)  ;;  %v321_v25 = vld [vmem:[%s1552_s1 + $0x38] sm:$0xff] (!%p833_p1) }
  0x27   : > { %v237_v17 = vrot.slane %v236_v11, 2  ;;  %v243_v18 = vrot.slane %v242_v12, 2  ;;  %v259_v19 = vadd.f32 %v258_v13, %v255_v7  ;;  %v271_v20 = vrot.slane %v270_v16, 4  ;;  %v320_v24 = vld [vmem:[%s1552_s1 + $0x30] sm:$0xff] (!%p833_p1) }
  0x28   : > { %v251_v21 = vrot.slane %v250_v14, 2  ;;  %v265_v22 = vadd.f32 %v264_v15, %v256_v9  ;;  %vm278_vm6 = vcmask 1040384   ;;  %v1285_v49 = vsub.s32 %v288_v38, %v290_v39  ;;  %v317_v9 = vld [vmem:[%s1552_s1 + $0x18] sm:$0xff] (!%p833_p1)  ;;  %v319_v15 = vld [vmem:[%s1552_s1 + $0x28] sm:$0xff] (!%p833_p1) }
  0x29   : > { %v238_v26 = vadd.f32 %v237_v17, %v236_v11  ;;  %v244_v27 = vadd.f32 %v243_v18, %v242_v12  ;;  %v260_v28 = vrot.slane %v259_v19, 2  ;;  %v272_v29 = vadd.f32 %v271_v20, %v270_v16  ;;  %v335_v11 = vld [vmem:[%s1552_s1 + $0xa8] sm:$0xff] (!%p833_p1)  ;;  %v336_v16 = vld [vmem:[%s1552_s1 + $0xb0] sm:$0xff] (!%p833_p1)  ;;  %v337_v17 = vld [vmem:[%s1552_s1 + $0xb8] sm:$0xff] (!%p833_p1) }
  0x2a   : > { %v252_v30 = vadd.f32 %v251_v21, %v250_v14  ;;  %v266_v31 = vrot.slane %v265_v22, 2  ;;  %vm303_vm7 = vcmask 1041408   ;;  %vm304_vm8 = vcmask 1043458   ;;  %v318_v14 = vld [vmem:[%s1552_s1 + $0x20] sm:$0xff] (!%p833_p1)  ;;  %v341_v38 = vld [vmem:[%s1552_s1 + $0xd8] sm:$0xff] (!%p833_p1) }
  0x2b   : > { %v239_v32 = vrot.slane %v238_v26, 1  ;;  %v245_v33 = vrot.slane %v244_v27, 1  ;;  %v261_v34 = vadd.f32 %v260_v28, %v259_v19  ;;  %v273_v35 = vrot.slane %v272_v29, 2  ;;  %vm305_vm9 = vmor %vm304_vm8, %vm303_vm7  ;;  %v346_v18 = vld [vmem:[%s1552_s1 + $0x100] sm:$0xff] (!%p833_p1)  ;;  %v347_v19 = vld [vmem:[%s1552_s1 + $0x108] sm:$0xff] (!%p833_p1) }
  0x2c   : > { %v253_v36 = vrot.slane %v252_v30, 1  ;;  %v267_v37 = vadd.f32 %v266_v31, %v265_v22  ;;  %vm306_vm10 = vcmask 537604   ;;  %v927_v0 = vpack.c.bf16 (!%p833_p1), %v331_v62, %v330_v61  ;;  %v348_v22 = vld [vmem:[%s1552_s1 + $0x110] sm:$0xff] (!%p833_p1)  ;;  %v339_v28 = vld [vmem:[%s1552_s1 + $0xc8] sm:$0xff] (!%p833_p1) }
  0x2d   : > { %v240_v40 = vadd.f32 %v239_v32, %v238_v26  ;;  %v262_v41 = vrot.slane %v261_v34, 1  ;;  %v274_v42 = vadd.f32 %v273_v35, %v272_v29  ;;  %v246_v43 = vadd.f32 %v245_v33, %v244_v27  ;;  %vm1294_vm11 = vmor %vm306_vm10, %vm305_vm9  ;;  %v349_v26 = vld [vmem:[%s1552_s1 + $0x118] sm:$0xff] (!%p833_p1)  ;;  %v338_v27 = vld [vmem:[%s1552_s1 + $0xc0] sm:$0xff] (!%p833_p1) }
  0x2e   : > { %v268_v44 = vrot.slane %v267_v37, 1  ;;  %v254_v45 = vadd.f32 %v253_v36, %v252_v30  ;;  %v1170_v4 = vmov (!%p833_p1), 0.0|0.0   ;;  %vm1171_vm12 = vmmov (!%p833_p1), 0   ;;  %928 = vmatprep.subr.bf16.mxu0 (!%p833_p1), %v927_v0  ;;  %v350_v30 = vld [vmem:[%s1552_s1 + $0x120] sm:$0xff] (!%p833_p1)  ;;  %v351_v31 = vld [vmem:[%s1552_s1 + $0x128] sm:$0xff] (!%p833_p1)  ;;  %v328_v0 = vld [vmem:[%s1552_s1 + $0x70] sm:$0xff] (!%p833_p1) }
  0x2f   : > { %v263_v46 = vadd.f32 %v262_v41, %v261_v34  ;;  %v275_v47 = vrot.slane %v274_v42, 1  ;;  %959 = vmatprep.subr.bf16.mxu1 (!%p833_p1), %v1170_v4  ;;  %v1172_v5 = vmov (!%p833_p1), 0.0   ;;  %v929_v6 = vpack.c.bf16 (!%p833_p1), %v315_v1, %v314_v63  ;;  %v322_v34 = vld [vmem:[%s1552_s1 + $0x40] sm:$0xff] (!%p833_p1)  ;;  %v323_v35 = vld [vmem:[%s1552_s1 + $0x48] sm:$0xff] (!%p833_p1)  ;;  %v352_v41 = vld [vmem:[%s1552_s1 + $0x130] sm:$0xff] (!%p833_p1) }
  0x30   : > { %v269_v48 = vadd.f32 %v268_v44, %v267_v37  ;;  %913 = vmatprep.mubr.msk.f32.mxu1 (!%p833_p1), %vm1171_vm12, %v1172_v5  ;;  %v931_v7 = vpack.c.bf16 (!%p833_p1), %v333_v3, %v332_v2  ;;  %v933_v12 = vpack.c.bf16 (!%p833_p1), %v317_v9, %v316_v8  ;;  %v935_v13 = vpack.c.bf16 (!%p833_p1), %v335_v11, %v334_v10  ;;  %v340_v37 = vld [vmem:[%s1552_s1 + $0xd0] sm:$0xff] (!%p833_p1)  ;;  %v329_v1 = vld [vmem:[%s1552_s1 + $0x78] sm:$0xff] (!%p833_p1)  ;;  %v545_v3 = vld [vmem:[%s1553_s2 + $0x8] sm:$0xff] (!%p833_p1) }
  0x31   : > { %v276_v50 = vadd.f32 %v275_v47, %v274_v42  ;;  %v279_v51 = vsel %vm278_vm6, %v240_v40, %v263_v46  ;;  %930 = vmatpush3.bf16.msra.mxu0 (!%p833_p1), %v929_v6  ;;  %v937_v20 = vpack.c.bf16 (!%p833_p1), %v319_v15, %v318_v14  ;;  %v960_v21 = vpack.c.bf16 (!%p833_p1), %v347_v19, %v346_v18  ;;  %v353_v42 = vld [vmem:[%s1552_s1 + $0x138] sm:$0xff] (!%p833_p1)  ;;  %v324_v46 = vld [vmem:[%s1552_s1 + $0x50] sm:$0xff] (!%p833_p1)  ;;  %v548_v6 = vld [vmem:[%s1553_s2 + $0x20] sm:$0xff] (!%p833_p1) }
  0x32   : > { %v280_v52 = vsel %vm278_vm6, %v246_v43, %v269_v48  ;;  %932 = vmatprep.subr.bf16.mxu0 (!%p833_p1), %v931_v7  ;;  %v939_v23 = vpack.c.bf16 (!%p833_p1), %v337_v17, %v336_v16  ;;  %v963_v29 = vpack.c.bf16 (!%p833_p1), %v349_v26, %v348_v22  ;;  %v941_v32 = vpack.c.bf16 (!%p833_p1), %v321_v25, %v320_v24  ;;  %v325_v47 = vld [vmem:[%s1552_s1 + $0x58] sm:$0xff] (!%p833_p1)  ;;  %v342_v48 = vld [vmem:[%s1552_s1 + $0xe0] sm:$0xff] (!%p833_p1)  ;;  %v554_v11 = vld [vmem:[%s1553_s2 + $0x50] sm:$0x3f] (!%p833_p1) }
  0x33   : > { %v281_v53 = vsel %vm278_vm6, %v254_v45, %v276_v50  ;;  %v285_v54 = vcombine.low %v279_v51, %v280_v52  ;;  %961 = vmatpush3.bf16.msra.mxu1 (!%p833_p1), %v960_v21  ;;  %v943_v33 = vpack.c.bf16 (!%p833_p1), %v339_v28, %v338_v27  ;;  %v966_v39 = vpack.c.bf16 (!%p833_p1), %v351_v31, %v350_v30  ;;  %v343_v50 = vld [vmem:[%s1552_s1 + $0xe8] sm:$0xff] (!%p833_p1)  ;;  %v544_v7 = vld [vmem:[%s1553_s2] sm:$0xff] (!%p833_p1)  ;;  %v547_v9 = vld [vmem:[%s1553_s2 + $0x18] sm:$0xff] (!%p833_p1) }
  0x34   : > { %v299_v55 = vrot.slane %v281_v53, %v1285_v49  ;;  %962 = vmatprep.subr.bf16.mxu1 (!%p833_p1), %v1170_v4  ;;  %v945_v43 = vpack.c.bf16 (!%p833_p1), %v323_v35, %v322_v34  ;;  %v947_v45 = vpack.c.bf16 (!%p833_p1), %v341_v38, %v340_v37  ;;  %v969_v51 = vpack.c.bf16 (!%p833_p1), %v353_v42, %v352_v41  ;;  %v551_v10 = vld [vmem:[%s1553_s2 + $0x38] sm:$0xff] (!%p833_p1)  ;;  %v550_v15 = vld [vmem:[%s1553_s2 + $0x30] sm:$0xff] (!%p833_p1)  ;;  %v553_v16 = vld [vmem:[%s1553_s2 + $0x48] sm:$0x3f] (!%p833_p1) }
  0x35   : > { %v292_v56 = vrot.slane %v285_v54, %v1285_v49  ;;  %312 = sbr.rel (%p833_p1) target bundleno = 552 (0x228), region = 44  ;;  %934 = vmatpush3.bf16.msra.mxu0 (!%p833_p1), %v933_v12  ;;  %v949_v53 = vpack.c.bf16 (!%p833_p1), %v325_v47, %v324_v46  ;;  %v951_v54 = vpack.c.bf16 (!%p833_p1), %v343_v50, %v342_v48  ;;  %v957_v2 = vpack.c.bf16 (!%p833_p1), %v329_v1, %v328_v0  ;;  %v546_v34 = vld [vmem:[%s1553_s2 + $0x10] sm:$0xff] (!%p833_p1)  ;;  %v549_v35 = vld [vmem:[%s1553_s2 + $0x28] sm:$0xff] (!%p833_p1) }
  0x36   : > { %936 = vmatprep.subr.bf16.mxu0 (!%p833_p1), %v935_v13  ;;  %vm560_vm13 = vcmask (!%p833_p1), 1045504   ;;  %v971_v8 = vpack.c.bf16 (!%p833_p1), %v548_v6, %v545_v3  ;;  %v973_v12 = vpack.c.bf16 (!%p833_p1), %v547_v9, %v544_v7  ;;  %v975_v13 = vpack.c.bf16 (!%p833_p1), %v554_v11, %v551_v10 }
  0x37   : > { %v300_v58 = vcombine.low %v292_v56, %v299_v55  ;;  %964 = vmatpush3.bf16.msra.mxu1 (!%p833_p1), %v963_v29  ;;  %v326_v55 = vld [vmem:[%s1552_s1 + $0x60] sm:$0xff] (!%p833_p1)  ;;  %v327_v56 = vld [vmem:[%s1552_s1 + $0x68] sm:$0xff] (!%p833_p1)  ;;  %vm1173_vm14 = vmmov (!%p833_p1), 1   ;;  %v978_v17 = vpack.c.bf16 (!%p833_p1), %v553_v16, %v550_v15  ;;  %vm556_vm0 = vcmask (!%p833_p1), 244736  }
  0x38   : > { %965 = vmatprep.subr.bf16.mxu1 (!%p833_p1), %v1170_v4  ;;  %v953_v62 = vpack.c.bf16 (!%p833_p1), %v327_v56, %v326_v55  ;;  %vm1456_vm15 = vmpackc.low (!%p833_p1), %vm560_vm13, %vm1173_vm14  ;;  %v982_v38 = vpack.c.bf16 (!%p833_p1), %v549_v35, %v546_v34 }
  0x39   : > { %v302_v60 = vadd.f32 %v300_v58, %v277_v57  ;;  %938 = vmatpush3.bf16.msra.mxu0 (!%p833_p1), %v937_v20  ;;  %v344_v57 = vld [vmem:[%s1552_s1 + $0xf0] sm:$0xff] (!%p833_p1)  ;;  %v345_v58 = vld [vmem:[%s1552_s1 + $0xf8] sm:$0xff] (!%p833_p1) }
  0x3a   : > { %940 = vmatprep.subr.bf16.mxu0 (!%p833_p1), %v939_v23  ;;  %v955_v63 = vpack.c.bf16 (!%p833_p1), %v345_v58, %v344_v57  ;;  %v836_v23 = vld [vmem:[%s1554_s3] ss:$0 sm:$0xff] (!%p833_p1) }
  0x3b   : > { %308 = vst.msk [vmem:[%s1279_s29] sm:$0x3f] %vm1294_vm11, %v302_v60  ;;  %967 = vmatpush3.bf16.msra.mxu1 (!%p833_p1), %v966_v39  ;;  %v354_v60 = vld [vmem:[%s1552_s1 + $0x140] sm:$0x3] (!%p833_p1) }
  0x3c   : > { %968 = vmatprep.subr.bf16.mxu1 %v1170_v4  ;;  %v552_v39 = vld [vmem:[%s1553_s2 + $0x40] sm:$0xff] }
  0x3d   : > { %942 = vmatpush3.bf16.msra.mxu0 %v941_v32 }
  0x3e   : > { %944 = vmatprep.subr.bf16.mxu0 %v943_v33 }
  0x3f   : > { %970 = vmatpush3.bf16.msra.mxu1 %v969_v51 }
  0x40   : > { %911 = vmatprep.subr.mxu1 %v1172_v5 }
  0x41   : > { %946 = vmatpush3.bf16.msra.mxu0 %v945_v43 }
  0x42   : > { %v313_v36 = vld [vmem:[%s1279_s29] sm:$0x3f]  ;;  %948 = vmatprep.subr.bf16.mxu0 %v947_v45 }
  0x43   : > { %v363_v40 = vrot.slane %v313_v36, %v1285_v49  ;;  %v356_v52 = vcombine.high %v313_v36, %v313_v36  ;;  %912 = vmatpush3.msk.msra.mxu1 %vm303_vm7, %v354_v60 }
  0x44   : > { %972 = vmatprep.subr.bf16.mxu1 %v971_v8 }
  0x45   : > { %v371_v44 = vcombine.high %v363_v40, %v363_v40  ;;  %v370_v61 = vrot.slane %v356_v52, %v1285_v49  ;;  %950 = vmatpush3.bf16.msra.mxu0 %v949_v53 }
  0x46   : > { %952 = vmatprep.subr.bf16.mxu0 %v951_v54 }
  0x47   : > { %443 = vmatprep.mubr.f32.mxu0 %v371_v44  ;;  %914 = vmatmul.mubr.msk.f32.vlgmr.msra.gmra.mrb[0].mxu1 %vm247_vm5, %v370_v61 }
  0x48   : > { %634 = vmatprep.mubr.f32.mxu1 %v1172_v5  ;;  %974 = vmatpush1.bf16.msra.mxu1 %v973_v12 }
  0x49   : > { %954 = vmatpush3.bf16.msra.mxu0 %v953_v62  ;;  %977 = vmatprep.subr.msk.bf16.mxu1 %vm1456_vm15, %v975_v13 }
  0x4a   : > { %956 = vmatprep.subr.bf16.mxu0 %v955_v63 }
  0x4c   : > { %980 = vmatpush1.bf16.msk.msra.mxu1 %vm1456_vm15, %v978_v17 }
  0x4d   : > { %958 = vmatpush3.bf16.msra.mxu0 %v957_v2  ;;  %981 = vmatprep.subr.bf16.mxu1 %v1170_v4 }
  0x50   : > { %444 = vmatmul.mubr.f32.vlgmr.msra.gmra.mrb[0].mxu0 %v363_v40  ;;  %v555_v40 = vld [vmem:[%s1553_s2 + $0x58] sm:$0x3f] }
  0x51   : > { %v985_v42 = vpack.c.bf16 %v555_v40, %v552_v39 }
 0x11a   : > { %v515_v18 = vpop.f32.mrb[0].mxu1 }
 0x11b   : > { %v915_v19 = vpop.f32.mrb[1].mxu1 }
 0x123   : > { %v877_v20 = vpop.f32.mrb[0].mxu0 }
 0x124   : > { %v878_v21 = vpop.f32.mrb[1].mxu0 }
 0x125   : > { %v879_v22 = vadd.f32 %v878_v21, %v877_v20 }
 0x127   : > { %v516_v24 = vadd.f32 %v879_v22, %v515_v18 }
 0x129   : > { %v526_v25 = vmul.f32 %v836_v23, %v516_v24 }
 0x12b   : > { %v527_v26 = vmul.f32 %v526_v25, %v526_v25  ;;  %v535_v32 = vsub.f32 0.0, %v526_v25 }
 0x12d   : > { %v529_v27 = vrot.slane %v527_v26, 7 }
 0x12f   : > { %v531_v28 = vsub.f32 %v526_v25, %v529_v27 }
 0x131   : > { %v532_v29 = vmax.f32 %v531_v28, 0.0 }
 0x133   : > { %v533_v30 = vadd.f32 1e-05, %v532_v29 }
 0x135   : > { %1070 = vrsqrt.f32 %v533_v30 }
 0x13f   : > { %v1071_v31 = vpop.eup %1070 }
 0x140   : > { %v537_v33 = vrot.slane %v1071_v31, 1 }
 0x142   : > { %v539_v36 = vmul.f32 %v537_v33, %v535_v32 }
 0x144   : > { %v541_v37 = vrot.slane %v539_v36, 7 }
 0x146   : > { %v543_v41 = vsel %vm278_vm6, %v537_v33, %v541_v37 }
 0x147   : > { %839 = vmatmul.mubr.msk.f32.vlgmr.msra.gmra.mrb[2].mxu1 %vm556_vm0, %v543_v41 }
 0x148   : > { %983 = vmatpush3.bf16.msra.mxu1 %v982_v38  ;;  %924 = vmatprep.mubr.msk.f32.mxu1 %vm1171_vm12, %v1172_v5 }
 0x149   : > { %984 = vmatprep.subr.bf16.mxu1 %v1170_v4 }
 0x14c   : > { %987 = vmatpush3.bf16.msk.msra.mxu1 %vm1456_vm15, %v985_v42 }
 0x14f   : > { %925 = vmatmul.mubr.msk.f32.vlgmr.msra.gmra.mrb[4].mxu1 %vm556_vm0, %v543_v41 }
 0x21a   : > { %v636_v43 = vpop.f32.mrb[2].mxu1 }
 0x21b   : > { %v638_v44 = vpop.f32.mrb[3].mxu1 }
 0x21c   : > { %v714_v45 = vcombine.low %v636_v43, %v638_v44 }
 0x21e   : > { %v721_v47 = vrot.slane %v714_v45, %v1285_v49 }
 0x222   : > { %v707_v46 = vpop.f32.mrb[4].mxu1 }
 0x223   : > { %v728_v48 = vrot.slane %v707_v46, %v1285_v49  ;;  %v926_v50 = vpop.f32.mrb[5].mxu1 }
 0x225   : > { %v729_v51 = vcombine.low %v721_v47, %v728_v48 }
 0x227   : > { %731 = vst.msk [vmem:[%s1279_s29] sm:$0x3f] %vm1294_vm11, %v729_v51 }
 0x228 PF: > { %s991_s30 = smul.u32 96, %s1154_s19  ;;  %s747_s7 = sshll.u32 %s1279_s29, 4  ;;  %s748_s7 = int_to_ptr.vmem [resolvable:$true] %s747_s7 }
 0x229   : > { %s733_s11 = scalar_lea.sflag [#allocation3], %s210_s6  ;;  %s1072_s12 = scalar_lea.vmem %s748_s7, 96 }
 0x22a   : > { %s1502_s10 = scalar_lea.hbm %s1555_s4, %s991_s30  ;;  %p1073_p2 = scmp.ne.s32.totalorder %s748_s7, %s1072_s12 }
 0x22b   : > { %s1174_s13 = smov [#allocation2]  }
 0x22c   : > { %p1074_p4 = pnand %p1073_p2, %p1249_p3  ;;  %s1076_s14 = sshll.u32 %s1174_s13, 4  ;;  %s1077_s14 = int_to_ptr.vmem [resolvable:$false] %s1076_s14 }
 0x22d   : > { %s1078_s18 = scalar_lea.vmem %s1077_s14, 192  ;;  %p1079_p6 = scmp.lt.s32.totalorder %s748_s7, %s1077_s14 }
 0x22e   : > { %p1075_p5 = pneg %p1074_p4  ;;  %p1080_p7 = scmp.lt.s32.totalorder %s1078_s18, %s1072_s12 }
 0x230   : > { %p1081_p8 = por %p1080_p7, %p1079_p6 }
 0x232   : > { %p1082_p10 = pnand %p1081_p8, %p1075_p5 }
 0x234   : > { %1085 = shalt.err (!%p1082_p10)
}
 0x235   : > { %s1086_s19 = scalar_lea.hbm %s1502_s10, 96  ;;  %s1090_s23 = scalar_lea.hbm %s1555_s4, 192 }
 0x236   : > { %p1087_p11 = scmp.ne.s32.totalorder %s1502_s10, %s1086_s19  ;;  %p1091_p0 = scmp.lt.u32.totalorder %s1502_s10, %s1555_s4 }
 0x237   : > { %p1092_p1 = scmp.lt.u32.totalorder %s1090_s23, %s1086_s19  ;;  %p1094_p4 = scmp.lt.u32.totalorder %s1086_s19, %s1502_s10 }
 0x238   : > { %p1088_p12 = pnand %p1087_p11, %p1249_p3 }
 0x239   : > { %p1093_p2 = por %p1092_p1, %p1091_p0 }
 0x23a   : > { %p1089_p13 = pneg %p1088_p12 }
 0x23b   : > { %p1095_p5 = por %p1094_p4, %p1093_p2 }
 0x23d   : > { %p1096_p6 = pnand %p1095_p5, %p1089_p13 }
 0x23f   : > { %1099 = shalt.err (!%p1096_p6)
}
 0x240   : > { %992 = dma.vmem_to_hbm [thread:$0]  (%p1249_p3), %s748_s7, 96, %s1502_s10, %s733_s11  }
 0x241 PF: > { %p998_p7 = scmp.ge.s32.totalorder %s1166_s22, 2  ;;  %s759_s8 = sand.u32 1, %s1138_s15  }
 0x242   : > { %s760_s9 = scalar_lea.sflag [#allocation3], %s759_s8 }
 0x243   : > { %p995_p8 = pnand %p998_p7, %p1259_p9 }
 0x245   : > { %1133 = dma.done.wait (!%p995_p8), %s760_s9, 96  }
 0x246   : > { %1135 = vsyncadd (!%p995_p8), %s760_s9, 4294967200  ;;  %s17_s22 = sadd.s32 1, %s1166_s22   ;;  %s1562_s15 = smov %s1142_s16 }
 0x247   : > { %p14_p10 = scmp.ge.s32.totalorder %s17_s22, 6   ;;  %s1563_s16 = smov %s1146_s17 }
 0x248   : > { %s1564_s17 = smov %s1267_s5  ;;  %s1565_s18 = smov %s1158_s20 }
 0x249   : > { %s1566_s19 = smov %s1162_s21  ;;  %s1567_s20 = smov %s1570_s25 }
 0x24a   : > { %s1568_s21 = smov %s1574_s26  ;;  %16 = sbr.rel (!%p14_p10) target bundleno = 5 (0x5), region = 79 }
 0x251   :  { %765 = vsyncpa [#allocation3], 1 }
 0x252   :  { %767 = vsyncpa [#allocation3 + $0x1], 1 }

</bundles_post_ra>
